<compile_context>
chip_gen: v6e
topology: v6e:2x2x1
jax: 0.10.0
libtpu: 0.0.40
codegen_flags: <defaults>
</compile_context>

<pallas_src>
from functools import partial

import jax
import jax.numpy as jnp
import numpy as np
from jax.experimental import pallas as pl
from jax.experimental.pallas import tpu as pltpu

# MXU operand dtype.  bf16 is recommended at scale on v6e/v7x (bf16-native MXUs, half the
# DMA/VMEM bytes); kept f32 here so the toy-shape output matches the f32 reference to ~1e-5.
MXU_DTYPE = jnp.float32


# ------------------------------ fused Pallas kernel ------------------------------

def _inception_block_kernel(x_ref, w1_ref, b1_ref, w2_ref, b2_ref, wp_ref, bp_ref,
                            o_ref, xp_ref, h1p_ref, hp_ref,
                            *, kernels, stride, seq_len, out_len, pad_max):
    L = seq_len
    c_in = xp_ref.shape[1]
    c_mid = h1p_ref.shape[1]          # 3 * channel_n (all branches batched on lanes)
    c_out = o_ref.shape[-1]
    k_max = w1_ref.shape[0]

    # ---- layer 1: the three branch convs as one tap-accumulated matmul (BN folded) ----
    if pad_max:
        xp_ref[0:pad_max, :] = jnp.zeros((pad_max, c_in), jnp.float32)
        xp_ref[pad_max + L:pad_max + L + pad_max, :] = jnp.zeros((pad_max, c_in), jnp.float32)
    xp_ref[pad_max:pad_max + L, :] = x_ref[0]

    acc1 = jnp.zeros((L, c_mid), jnp.float32)
    for tap in range(k_max):          # static unroll; per-tap (L, c_in) @ (c_in, c_mid)
        acc1 += jnp.dot(xp_ref[tap:tap + L, :].astype(MXU_DTYPE),
                        w1_ref[tap].astype(MXU_DTYPE),
                        preferred_element_type=jnp.float32)
    h1 = jnp.maximum(acc1 + b1_ref[...], 0.0)

    # ---- layer 2: block-diagonal (per-branch) conv, same centered-tap trick ----
    if pad_max:
        h1p_ref[0:pad_max, :] = jnp.zeros((pad_max, c_mid), jnp.float32)
        h1p_ref[pad_max + L:pad_max + L + pad_max, :] = jnp.zeros((pad_max, c_mid), jnp.float32)
    h1p_ref[pad_max:pad_max + L, :] = h1

    acc2 = jnp.zeros((L, c_mid), jnp.float32)
    for tap in range(k_max):
        acc2 += jnp.dot(h1p_ref[tap:tap + L, :].astype(MXU_DTYPE),
                        w2_ref[tap].astype(MXU_DTYPE),
                        preferred_element_type=jnp.float32)
    h2 = jnp.maximum(acc2 + b2_ref[...], 0.0)

    # ---- per-branch SAME-reflect avg pool fused with the final 1x1 channel pooling ----
    acc_out = jnp.zeros((out_len, c_out), jnp.float32)
    for j, k in enumerate(kernels):
        p = max(0, (out_len - 1) * stride + k - L)
        pad_left = p // 2
        pad_right = p - pad_left
        # Reflect-pad h2 into the shared scratch; only rows [0, L + p) are read below.
        hp_ref[pad_left:pad_left + L, :] = h2
        for i in range(pad_left):                      # static, <= 3 rows
            src = pad_left - i
            hp_ref[i:i + 1, :] = h2[src:src + 1, :]
        for i in range(pad_right):                     # static, <= 3 rows
            src = L - 2 - i
            dst = pad_left + L + i
            hp_ref[dst:dst + 1, :] = h2[src:src + 1, :]
        # AvgPool1d(kernel=k, stride): k strided-slice adds on the VPU.
        pooled = jnp.zeros((out_len, c_mid), jnp.float32)
        for tap in range(k):
            pooled += hp_ref[pl.ds(tap, out_len, stride=stride), :]
        pooled = pooled * (1.0 / k)
        # wp_ref[j] is zero outside branch j's channel rows, so summing the three
        # matmuls IS the concat([x_k1, x_k2, x_k3], dim=1) followed by the 1x1 conv.
        acc_out += jnp.dot(pooled.astype(MXU_DTYPE), wp_ref[j].astype(MXU_DTYPE),
                           preferred_element_type=jnp.float32)

    o_ref[0] = acc_out + bp_ref[...]


# ------------------------- host-side weight folding / packing ---------------------

def _fold_bn(w, b, g, beta, m, v, eps=1e-5):
    """Fold eval-mode BatchNorm (and the conv bias) into the conv weights."""
    scale = g / jnp.sqrt(v + eps)                     # (c_out,)
    return w * scale[:, None, None], (b - m) * scale + beta


def _pack_block_weights(params, kernels, c_in, cn, k_max):
    """Batch the three branches: layer1 concatenated on output channels, layer2 block-diagonal,
    final 1x1 projection split into per-branch slabs (zero rows outside the branch)."""
    nb = len(kernels)
    c_mid = nb * cn
    w1 = jnp.zeros((k_max, c_in, c_mid), jnp.float32)
    b1 = jnp.zeros((c_mid,), jnp.float32)
    w2 = jnp.zeros((k_max, c_mid, c_mid), jnp.float32)
    b2 = jnp.zeros((c_mid,), jnp.float32)
    wp = jnp.zeros((nb, c_mid, cn), jnp.float32)
    for j, (bp, k) in enumerate(zip(params['branches'], kernels)):
        off = (k_max - k) // 2                        # center-align smaller kernels' taps
        c0 = j * cn
        wf1, bf1 = _fold_bn(bp['w1'], bp['b1'], bp['g1'], bp['beta1'], bp['m1'], bp['v1'])
        wf2, bf2 = _fold_bn(bp['w2'], bp['b2'], bp['g2'], bp['beta2'], bp['m2'], bp['v2'])
        w1 = w1.at[off:off + k, :, c0:c0 + cn].set(jnp.transpose(wf1, (2, 1, 0)))
        b1 = b1.at[c0:c0 + cn].set(bf1)
        w2 = w2.at[off:off + k, c0:c0 + cn, c0:c0 + cn].set(jnp.transpose(wf2, (2, 1, 0)))
        b2 = b2.at[c0:c0 + cn].set(bf2)
        wp = wp.at[j, c0:c0 + cn, :].set(params['pool_w'][:, c0:c0 + cn, 0].T)
    return (w1, b1.reshape(1, c_mid), w2, b2.reshape(1, c_mid),
            wp, params['pool_b'].reshape(1, cn))


# ---------------------------------- forward ---------------------------------------

@partial(jax.jit, static_argnames=("kernels", "stride"))
def inception_block_forward(x_ncl, params, kernels, stride):
    n, c_in, L = x_ncl.shape
    cn = params['pool_b'].shape[0]
    nb = len(kernels)
    c_mid = nb * cn
    k_max = max(kernels)
    pad_max = k_max // 2
    out_len = (L + stride - 1) // stride
    pool_pad_max = max(0, (out_len - 1) * stride + k_max - L)

    w1, b1, w2, b2, wp, bp = _pack_block_weights(params, kernels, c_in, cn, k_max)
    x_nlc = jnp.transpose(x_ncl, (0, 2, 1))           # channel-last once, outside the kernel

    kernel = partial(_inception_block_kernel,
                     kernels=tuple(kernels), stride=stride,
                     seq_len=L, out_len=out_len, pad_max=pad_max)

    out_nlc = pl.pallas_call(
        kernel,
        out_shape=jax.ShapeDtypeStruct((n, out_len, cn), jnp.float32),
        grid=(n,),
        in_specs=[
            pl.BlockSpec((1, L, c_in), lambda b: (b, 0, 0)),
            pl.BlockSpec((k_max, c_in, c_mid), lambda b: (0, 0, 0)),
            pl.BlockSpec((1, c_mid), lambda b: (0, 0)),
            pl.BlockSpec((k_max, c_mid, c_mid), lambda b: (0, 0, 0)),
            pl.BlockSpec((1, c_mid), lambda b: (0, 0)),
            pl.BlockSpec((nb, c_mid, cn), lambda b: (0, 0, 0)),
            pl.BlockSpec((1, cn), lambda b: (0, 0)),
        ],
        out_specs=pl.BlockSpec((1, out_len, cn), lambda b: (b, 0, 0)),
        scratch_shapes=[
            pltpu.VMEM((L + 2 * pad_max, c_in), jnp.float32),    # zero-padded x
            pltpu.VMEM((L + 2 * pad_max, c_mid), jnp.float32),   # zero-padded h1
            pltpu.VMEM((L + pool_pad_max, c_mid), jnp.float32),  # reflect-padded h2 (per branch)
        ],
        compiler_params=pltpu.CompilerParams(dimension_semantics=("parallel",)),
    )(x_nlc, w1, b1, w2, b2, wp, bp)

    return jnp.transpose(out_nlc, (0, 2, 1))          # back to PyTorch NCL layout


# ------------------------- pure-JAX reference (correctness) ------------------------

def _ref_conv_bn_relu(x, w, b, g, beta, m, v, eps=1e-5):
    pad = w.shape[2] // 2
    y = jax.lax.conv_general_dilated(
        x, w, window_strides=(1,), padding=[(pad, pad)],
        dimension_numbers=('NCH', 'OIH', 'NCH'))
    y = y + b[None, :, None]
    y = (y - m[None, :, None]) / jnp.sqrt(v[None, :, None] + eps)
    y = y * g[None, :, None] + beta[None, :, None]
    return jnp.maximum(y, 0.0)


def _ref_avg_pool(x, k, stride):
    n, c, length = x.shape
    out_dim = (length + stride - 1) // stride
    p = max(0, (out_dim - 1) * stride + k - length)
    xp = jnp.pad(x, ((0, 0), (0, 0), (p // 2, p - p // 2)), mode='reflect')
    lp = xp.shape[-1]
    out_len = (lp - k) // stride + 1
    taps = [xp[:, :, t: t + (out_len - 1) * stride + 1: stride] for t in range(k)]
    return jnp.mean(jnp.stack(taps, axis=0), axis=0)


def _ref_inception(x, params, kernels, stride):
    branches = []
    for bp, k in zip(params['branches'], kernels):
        h = _ref_conv_bn_relu(x, bp['w1'], bp['b1'], bp['g1'], bp['beta1'], bp['m1'], bp['v1'])
        h = _ref_conv_bn_relu(h, bp['w2'], bp['b2'], bp['g2'], bp['beta2'], bp['m2'], bp['v2'])
        branches.append(_ref_avg_pool(h, k, stride))
    cat = jnp.concatenate(branches, axis=1)
    return (jnp.einsum('ncl,oc->nol', cat, params['pool_w'][:, :, 0])
            + params['pool_b'][None, :, None])


# ------------------------------ deterministic init ---------------------------------

def init_params(key, c_in, cn, kernels):
    branches = []
    for k in kernels:
        key, *ks = jax.random.split(key, 13)
        branches.append(dict(
            w1=0.2 * jax.random.normal(ks[0], (cn, c_in, k), jnp.float32),
            b1=0.1 * jax.random.normal(ks[1], (cn,), jnp.float32),
            g1=1.0 + 0.1 * jax.random.normal(ks[2], (cn,), jnp.float32),
            beta1=0.1 * jax.random.normal(ks[3], (cn,), jnp.float32),
            m1=0.1 * jax.random.normal(ks[4], (cn,), jnp.float32),
            v1=jax.random.uniform(ks[5], (cn,), jnp.float32, 0.5, 1.5),
            w2=0.2 * jax.random.normal(ks[6], (cn, cn, k), jnp.float32),
            b2=0.1 * jax.random.normal(ks[7], (cn,), jnp.float32),
            g2=1.0 + 0.1 * jax.random.normal(ks[8], (cn,), jnp.float32),
            beta2=0.1 * jax.random.normal(ks[9], (cn,), jnp.float32),
            m2=0.1 * jax.random.normal(ks[10], (cn,), jnp.float32),
            v2=jax.random.uniform(ks[11], (cn,), jnp.float32, 0.5, 1.5),
        ))
    key, kw, kb = jax.random.split(key, 3)
    return dict(
        branches=branches,
        pool_w=0.2 * jax.random.normal(kw, (cn, 3 * cn, 1), jnp.float32),
        pool_b=0.1 * jax.random.normal(kb, (cn,), jnp.float32),
    )


# ------------------------------------ main ------------------------------------------

if __name__ == "__main__":
    training_params = {
        'data_dimensions': (4, 16),               # (input_channel, input_dim)
        'channel_n': 8,
        'kernels': {'k1': 3, 'k2': 5, 'k3': 7},
    }
    stride = 2
    kernels = (training_params['kernels']['k1'],
               training_params['kernels']['k2'],
               training_params['kernels']['k3'])
    c_in, length = training_params['data_dimensions']
    cn = training_params['channel_n']
    batch = 2

    key = jax.random.PRNGKey(0)
    key, kx, kp = jax.random.split(key, 3)
    x = jax.random.normal(kx, (batch, c_in, length), jnp.float32)   # NCL, like PyTorch
    params = init_params(kp, c_in, cn, kernels)

    out = inception_block_forward(x, params, kernels=kernels, stride=stride)
    out = jax.block_until_ready(out)

    ref = _ref_inception(x, params, kernels, stride)
    assert out.shape == (batch, cn, (length + stride - 1) // stride), out.shape
    np.testing.assert_allclose(np.asarray(out), np.asarray(ref), rtol=5e-4, atol=5e-4)

    print("KERNEL_OK")
</pallas_src>

<mosaic_0001>
module attributes {stable_mosaic.version = 11 : i64} {
  func.func @_inception_block_kernel(%arg0: i32, %arg1: memref<1x16x4xf32, #tpu.memory_space<vmem>>, %arg2: memref<7x4x24xf32, #tpu.memory_space<vmem>>, %arg3: memref<1x24xf32, #tpu.memory_space<vmem>>, %arg4: memref<7x24x24xf32, #tpu.memory_space<vmem>>, %arg5: memref<1x24xf32, #tpu.memory_space<vmem>>, %arg6: memref<3x24x8xf32, #tpu.memory_space<vmem>>, %arg7: memref<1x8xf32, #tpu.memory_space<vmem>>, %arg8: memref<1x8x8xf32, #tpu.memory_space<vmem>>, %arg9: memref<22x4xf32, #tpu.memory_space<vmem>>, %arg10: memref<22x24xf32, #tpu.memory_space<vmem>>, %arg11: memref<21x24xf32, #tpu.memory_space<vmem>>) attributes {dimension_semantics = [#tpu.dimension_semantics<parallel>], iteration_bounds = array<i64: 2>, scalar_prefetch = 0 : i64, scratch_operands = 3 : i64, tpu.core_type = #tpu.core_type<tc>, window_params = [{transform_indices = @transform_0, window_bounds = array<i64: 1, 16, 4>}, {pipeline_mode = #tpu.pipeline_mode<synchronous>, transform_indices = @transform_1, window_bounds = array<i64: 7, 4, 24>}, {pipeline_mode = #tpu.pipeline_mode<synchronous>, transform_indices = @transform_2, window_bounds = array<i64: 1, 24>}, {pipeline_mode = #tpu.pipeline_mode<synchronous>, transform_indices = @transform_3, window_bounds = array<i64: 7, 24, 24>}, {pipeline_mode = #tpu.pipeline_mode<synchronous>, transform_indices = @transform_4, window_bounds = array<i64: 1, 24>}, {pipeline_mode = #tpu.pipeline_mode<synchronous>, transform_indices = @transform_5, window_bounds = array<i64: 3, 24, 8>}, {pipeline_mode = #tpu.pipeline_mode<synchronous>, transform_indices = @transform_6, window_bounds = array<i64: 1, 8>}, {transform_indices = @transform_7, window_bounds = array<i64: 1, 8, 8>}]} {
    %cst = arith.constant 0.000000e+00 : f32
    %0 = vector.broadcast %cst : f32 to vector<3x4xf32>
    %c0 = arith.constant 0 : index
    %c0_0 = arith.constant 0 : index
    %1 = vector.load %arg9[%c0, %c0_0] : memref<22x4xf32, #tpu.memory_space<vmem>>, vector<3x4xf32>
    tpu.vector_store %arg9[%c0, %c0_0], %0 {strides = array<i32>} : memref<22x4xf32, #tpu.memory_space<vmem>>, vector<3x4xf32>,
    %cst_1 = arith.constant 0.000000e+00 : f32
    %2 = vector.broadcast %cst_1 : f32 to vector<3x4xf32>
    %c19 = arith.constant 19 : index
    %c0_2 = arith.constant 0 : index
    %3 = vector.load %arg9[%c19, %c0_2] : memref<22x4xf32, #tpu.memory_space<vmem>>, vector<3x4xf32>
    tpu.vector_store %arg9[%c19, %c0_2], %2 {strides = array<i32>} : memref<22x4xf32, #tpu.memory_space<vmem>>, vector<3x4xf32>,
    %c0_3 = arith.constant 0 : index
    %c0_4 = arith.constant 0 : index
    %c0_5 = arith.constant 0 : index
    %4 = vector.load %arg1[%c0_3, %c0_4, %c0_5] : memref<1x16x4xf32, #tpu.memory_space<vmem>>, vector<1x16x4xf32>
    %5 = vector.shape_cast %4 : vector<1x16x4xf32> to vector<16x4xf32>
    %c3 = arith.constant 3 : index
    %c0_6 = arith.constant 0 : index
    %6 = vector.load %arg9[%c3, %c0_6] : memref<22x4xf32, #tpu.memory_space<vmem>>, vector<16x4xf32>
    tpu.vector_store %arg9[%c3, %c0_6], %5 {strides = array<i32>} : memref<22x4xf32, #tpu.memory_space<vmem>>, vector<16x4xf32>,
    %cst_7 = arith.constant 0.000000e+00 : f32
    %7 = vector.broadcast %cst_7 : f32 to vector<16x24xf32>
    %c0_8 = arith.constant 0 : index
    %c0_9 = arith.constant 0 : index
    %8 = vector.load %arg9[%c0_8, %c0_9] : memref<22x4xf32, #tpu.memory_space<vmem>>, vector<16x4xf32>
    %c0_10 = arith.constant 0 : index
    %c0_11 = arith.constant 0 : index
    %c0_12 = arith.constant 0 : index
    %9 = vector.load %arg2[%c0_10, %c0_11, %c0_12] : memref<7x4x24xf32, #tpu.memory_space<vmem>>, vector<1x4x24xf32>
    %10 = vector.shape_cast %9 : vector<1x4x24xf32> to vector<4x24xf32>
    %cst_13 = arith.constant dense<0.000000e+00> : vector<16x24xf32>
    %11 = tpu.matmul %8, %10, %cst_13 {dimension_numbers = #tpu.dot_dimension_numbers<[1], [0], [0], [1], [0, 0, 1, 1], [], []>} : vector<16x4xf32>, vector<4x24xf32>, vector<16x24xf32> -> vector<16x24xf32>
    %12 = arith.addf %7, %11 : vector<16x24xf32>
    %c1 = arith.constant 1 : index
    %c0_14 = arith.constant 0 : index
    %13 = vector.load %arg9[%c1, %c0_14] : memref<22x4xf32, #tpu.memory_space<vmem>>, vector<16x4xf32>
    %c1_15 = arith.constant 1 : index
    %c0_16 = arith.constant 0 : index
    %c0_17 = arith.constant 0 : index
    %14 = vector.load %arg2[%c1_15, %c0_16, %c0_17] : memref<7x4x24xf32, #tpu.memory_space<vmem>>, vector<1x4x24xf32>
    %15 = vector.shape_cast %14 : vector<1x4x24xf32> to vector<4x24xf32>
    %cst_18 = arith.constant dense<0.000000e+00> : vector<16x24xf32>
    %16 = tpu.matmul %13, %15, %cst_18 {dimension_numbers = #tpu.dot_dimension_numbers<[1], [0], [0], [1], [0, 0, 1, 1], [], []>} : vector<16x4xf32>, vector<4x24xf32>, vector<16x24xf32> -> vector<16x24xf32>
    %17 = arith.addf %12, %16 : vector<16x24xf32>
    %c2 = arith.constant 2 : index
    %c0_19 = arith.constant 0 : index
    %18 = vector.load %arg9[%c2, %c0_19] : memref<22x4xf32, #tpu.memory_space<vmem>>, vector<16x4xf32>
    %c2_20 = arith.constant 2 : index
    %c0_21 = arith.constant 0 : index
    %c0_22 = arith.constant 0 : index
    %19 = vector.load %arg2[%c2_20, %c0_21, %c0_22] : memref<7x4x24xf32, #tpu.memory_space<vmem>>, vector<1x4x24xf32>
    %20 = vector.shape_cast %19 : vector<1x4x24xf32> to vector<4x24xf32>
    %cst_23 = arith.constant dense<0.000000e+00> : vector<16x24xf32>
    %21 = tpu.matmul %18, %20, %cst_23 {dimension_numbers = #tpu.dot_dimension_numbers<[1], [0], [0], [1], [0, 0, 1, 1], [], []>} : vector<16x4xf32>, vector<4x24xf32>, vector<16x24xf32> -> vector<16x24xf32>
    %22 = arith.addf %17, %21 : vector<16x24xf32>
    %c3_24 = arith.constant 3 : index
    %c0_25 = arith.constant 0 : index
    %23 = vector.load %arg9[%c3_24, %c0_25] : memref<22x4xf32, #tpu.memory_space<vmem>>, vector<16x4xf32>
    %c3_26 = arith.constant 3 : index
    %c0_27 = arith.constant 0 : index
    %c0_28 = arith.constant 0 : index
    %24 = vector.load %arg2[%c3_26, %c0_27, %c0_28] : memref<7x4x24xf32, #tpu.memory_space<vmem>>, vector<1x4x24xf32>
    %25 = vector.shape_cast %24 : vector<1x4x24xf32> to vector<4x24xf32>
    %cst_29 = arith.constant dense<0.000000e+00> : vector<16x24xf32>
    %26 = tpu.matmul %23, %25, %cst_29 {dimension_numbers = #tpu.dot_dimension_numbers<[1], [0], [0], [1], [0, 0, 1, 1], [], []>} : vector<16x4xf32>, vector<4x24xf32>, vector<16x24xf32> -> vector<16x24xf32>
    %27 = arith.addf %22, %26 : vector<16x24xf32>
    %c4 = arith.constant 4 : index
    %c0_30 = arith.constant 0 : index
    %28 = vector.load %arg9[%c4, %c0_30] : memref<22x4xf32, #tpu.memory_space<vmem>>, vector<16x4xf32>
    %c4_31 = arith.constant 4 : index
    %c0_32 = arith.constant 0 : index
    %c0_33 = arith.constant 0 : index
    %29 = vector.load %arg2[%c4_31, %c0_32, %c0_33] : memref<7x4x24xf32, #tpu.memory_space<vmem>>, vector<1x4x24xf32>
    %30 = vector.shape_cast %29 : vector<1x4x24xf32> to vector<4x24xf32>
    %cst_34 = arith.constant dense<0.000000e+00> : vector<16x24xf32>
    %31 = tpu.matmul %28, %30, %cst_34 {dimension_numbers = #tpu.dot_dimension_numbers<[1], [0], [0], [1], [0, 0, 1, 1], [], []>} : vector<16x4xf32>, vector<4x24xf32>, vector<16x24xf32> -> vector<16x24xf32>
    %32 = arith.addf %27, %31 : vector<16x24xf32>
    %c5 = arith.constant 5 : index
    %c0_35 = arith.constant 0 : index
    %33 = vector.load %arg9[%c5, %c0_35] : memref<22x4xf32, #tpu.memory_space<vmem>>, vector<16x4xf32>
    %c5_36 = arith.constant 5 : index
    %c0_37 = arith.constant 0 : index
    %c0_38 = arith.constant 0 : index
    %34 = vector.load %arg2[%c5_36, %c0_37, %c0_38] : memref<7x4x24xf32, #tpu.memory_space<vmem>>, vector<1x4x24xf32>
    %35 = vector.shape_cast %34 : vector<1x4x24xf32> to vector<4x24xf32>
    %cst_39 = arith.constant dense<0.000000e+00> : vector<16x24xf32>
    %36 = tpu.matmul %33, %35, %cst_39 {dimension_numbers = #tpu.dot_dimension_numbers<[1], [0], [0], [1], [0, 0, 1, 1], [], []>} : vector<16x4xf32>, vector<4x24xf32>, vector<16x24xf32> -> vector<16x24xf32>
    %37 = arith.addf %32, %36 : vector<16x24xf32>
    %c6 = arith.constant 6 : index
    %c0_40 = arith.constant 0 : index
    %38 = vector.load %arg9[%c6, %c0_40] : memref<22x4xf32, #tpu.memory_space<vmem>>, vector<16x4xf32>
    %c6_41 = arith.constant 6 : index
    %c0_42 = arith.constant 0 : index
    %c0_43 = arith.constant 0 : index
    %39 = vector.load %arg2[%c6_41, %c0_42, %c0_43] : memref<7x4x24xf32, #tpu.memory_space<vmem>>, vector<1x4x24xf32>
    %40 = vector.shape_cast %39 : vector<1x4x24xf32> to vector<4x24xf32>
    %cst_44 = arith.constant dense<0.000000e+00> : vector<16x24xf32>
    %41 = tpu.matmul %38, %40, %cst_44 {dimension_numbers = #tpu.dot_dimension_numbers<[1], [0], [0], [1], [0, 0, 1, 1], [], []>} : vector<16x4xf32>, vector<4x24xf32>, vector<16x24xf32> -> vector<16x24xf32>
    %42 = arith.addf %37, %41 : vector<16x24xf32>
    %c0_45 = arith.constant 0 : index
    %c0_46 = arith.constant 0 : index
    %43 = vector.load %arg3[%c0_45, %c0_46] : memref<1x24xf32, #tpu.memory_space<vmem>>, vector<1x24xf32>
    %44 = vector.broadcast %43 : vector<1x24xf32> to vector<16x24xf32>
    %45 = arith.addf %42, %44 : vector<16x24xf32>
    %cst_47 = arith.constant 0.000000e+00 : f32
    %46 = vector.broadcast %cst_47 : f32 to vector<16x24xf32>
    %47 = arith.maximumf %45, %46 : vector<16x24xf32>
    %cst_48 = arith.constant 0.000000e+00 : f32
    %48 = vector.broadcast %cst_48 : f32 to vector<3x24xf32>
    %c0_49 = arith.constant 0 : index
    %c0_50 = arith.constant 0 : index
    %49 = vector.load %arg10[%c0_49, %c0_50] : memref<22x24xf32, #tpu.memory_space<vmem>>, vector<3x24xf32>
    tpu.vector_store %arg10[%c0_49, %c0_50], %48 {strides = array<i32>} : memref<22x24xf32, #tpu.memory_space<vmem>>, vector<3x24xf32>,
    %cst_51 = arith.constant 0.000000e+00 : f32
    %50 = vector.broadcast %cst_51 : f32 to vector<3x24xf32>
    %c19_52 = arith.constant 19 : index
    %c0_53 = arith.constant 0 : index
    %51 = vector.load %arg10[%c19_52, %c0_53] : memref<22x24xf32, #tpu.memory_space<vmem>>, vector<3x24xf32>
    tpu.vector_store %arg10[%c19_52, %c0_53], %50 {strides = array<i32>} : memref<22x24xf32, #tpu.memory_space<vmem>>, vector<3x24xf32>,
    %c3_54 = arith.constant 3 : index
    %c0_55 = arith.constant 0 : index
    %52 = vector.load %arg10[%c3_54, %c0_55] : memref<22x24xf32, #tpu.memory_space<vmem>>, vector<16x24xf32>
    tpu.vector_store %arg10[%c3_54, %c0_55], %47 {strides = array<i32>} : memref<22x24xf32, #tpu.memory_space<vmem>>, vector<16x24xf32>,
    %cst_56 = arith.constant 0.000000e+00 : f32
    %53 = vector.broadcast %cst_56 : f32 to vector<16x24xf32>
    %c0_57 = arith.constant 0 : index
    %c0_58 = arith.constant 0 : index
    %54 = vector.load %arg10[%c0_57, %c0_58] : memref<22x24xf32, #tpu.memory_space<vmem>>, vector<16x24xf32>
    %c0_59 = arith.constant 0 : index
    %c0_60 = arith.constant 0 : index
    %c0_61 = arith.constant 0 : index
    %55 = vector.load %arg4[%c0_59, %c0_60, %c0_61] : memref<7x24x24xf32, #tpu.memory_space<vmem>>, vector<1x24x24xf32>
    %56 = vector.shape_cast %55 : vector<1x24x24xf32> to vector<24x24xf32>
    %cst_62 = arith.constant dense<0.000000e+00> : vector<16x24xf32>
    %57 = tpu.matmul %54, %56, %cst_62 {dimension_numbers = #tpu.dot_dimension_numbers<[1], [0], [0], [1], [0, 0, 1, 1], [], []>} : vector<16x24xf32>, vector<24x24xf32>, vector<16x24xf32> -> vector<16x24xf32>
    %58 = arith.addf %53, %57 : vector<16x24xf32>
    %c1_63 = arith.constant 1 : index
    %c0_64 = arith.constant 0 : index
    %59 = vector.load %arg10[%c1_63, %c0_64] : memref<22x24xf32, #tpu.memory_space<vmem>>, vector<16x24xf32>
    %c1_65 = arith.constant 1 : index
    %c0_66 = arith.constant 0 : index
    %c0_67 = arith.constant 0 : index
    %60 = vector.load %arg4[%c1_65, %c0_66, %c0_67] : memref<7x24x24xf32, #tpu.memory_space<vmem>>, vector<1x24x24xf32>
    %61 = vector.shape_cast %60 : vector<1x24x24xf32> to vector<24x24xf32>
    %cst_68 = arith.constant dense<0.000000e+00> : vector<16x24xf32>
    %62 = tpu.matmul %59, %61, %cst_68 {dimension_numbers = #tpu.dot_dimension_numbers<[1], [0], [0], [1], [0, 0, 1, 1], [], []>} : vector<16x24xf32>, vector<24x24xf32>, vector<16x24xf32> -> vector<16x24xf32>
    %63 = arith.addf %58, %62 : vector<16x24xf32>
    %c2_69 = arith.constant 2 : index
    %c0_70 = arith.constant 0 : index
    %64 = vector.load %arg10[%c2_69, %c0_70] : memref<22x24xf32, #tpu.memory_space<vmem>>, vector<16x24xf32>
    %c2_71 = arith.constant 2 : index
    %c0_72 = arith.constant 0 : index
    %c0_73 = arith.constant 0 : index
    %65 = vector.load %arg4[%c2_71, %c0_72, %c0_73] : memref<7x24x24xf32, #tpu.memory_space<vmem>>, vector<1x24x24xf32>
    %66 = vector.shape_cast %65 : vector<1x24x24xf32> to vector<24x24xf32>
    %cst_74 = arith.constant dense<0.000000e+00> : vector<16x24xf32>
    %67 = tpu.matmul %64, %66, %cst_74 {dimension_numbers = #tpu.dot_dimension_numbers<[1], [0], [0], [1], [0, 0, 1, 1], [], []>} : vector<16x24xf32>, vector<24x24xf32>, vector<16x24xf32> -> vector<16x24xf32>
    %68 = arith.addf %63, %67 : vector<16x24xf32>
    %c3_75 = arith.constant 3 : index
    %c0_76 = arith.constant 0 : index
    %69 = vector.load %arg10[%c3_75, %c0_76] : memref<22x24xf32, #tpu.memory_space<vmem>>, vector<16x24xf32>
    %c3_77 = arith.constant 3 : index
    %c0_78 = arith.constant 0 : index
    %c0_79 = arith.constant 0 : index
    %70 = vector.load %arg4[%c3_77, %c0_78, %c0_79] : memref<7x24x24xf32, #tpu.memory_space<vmem>>, vector<1x24x24xf32>
    %71 = vector.shape_cast %70 : vector<1x24x24xf32> to vector<24x24xf32>
    %cst_80 = arith.constant dense<0.000000e+00> : vector<16x24xf32>
    %72 = tpu.matmul %69, %71, %cst_80 {dimension_numbers = #tpu.dot_dimension_numbers<[1], [0], [0], [1], [0, 0, 1, 1], [], []>} : vector<16x24xf32>, vector<24x24xf32>, vector<16x24xf32> -> vector<16x24xf32>
    %73 = arith.addf %68, %72 : vector<16x24xf32>
    %c4_81 = arith.constant 4 : index
    %c0_82 = arith.constant 0 : index
    %74 = vector.load %arg10[%c4_81, %c0_82] : memref<22x24xf32, #tpu.memory_space<vmem>>, vector<16x24xf32>
    %c4_83 = arith.constant 4 : index
    %c0_84 = arith.constant 0 : index
    %c0_85 = arith.constant 0 : index
    %75 = vector.load %arg4[%c4_83, %c0_84, %c0_85] : memref<7x24x24xf32, #tpu.memory_space<vmem>>, vector<1x24x24xf32>
    %76 = vector.shape_cast %75 : vector<1x24x24xf32> to vector<24x24xf32>
    %cst_86 = arith.constant dense<0.000000e+00> : vector<16x24xf32>
    %77 = tpu.matmul %74, %76, %cst_86 {dimension_numbers = #tpu.dot_dimension_numbers<[1], [0], [0], [1], [0, 0, 1, 1], [], []>} : vector<16x24xf32>, vector<24x24xf32>, vector<16x24xf32> -> vector<16x24xf32>
    %78 = arith.addf %73, %77 : vector<16x24xf32>
    %c5_87 = arith.constant 5 : index
    %c0_88 = arith.constant 0 : index
    %79 = vector.load %arg10[%c5_87, %c0_88] : memref<22x24xf32, #tpu.memory_space<vmem>>, vector<16x24xf32>
    %c5_89 = arith.constant 5 : index
    %c0_90 = arith.constant 0 : index
    %c0_91 = arith.constant 0 : index
    %80 = vector.load %arg4[%c5_89, %c0_90, %c0_91] : memref<7x24x24xf32, #tpu.memory_space<vmem>>, vector<1x24x24xf32>
    %81 = vector.shape_cast %80 : vector<1x24x24xf32> to vector<24x24xf32>
    %cst_92 = arith.constant dense<0.000000e+00> : vector<16x24xf32>
    %82 = tpu.matmul %79, %81, %cst_92 {dimension_numbers = #tpu.dot_dimension_numbers<[1], [0], [0], [1], [0, 0, 1, 1], [], []>} : vector<16x24xf32>, vector<24x24xf32>, vector<16x24xf32> -> vector<16x24xf32>
    %83 = arith.addf %78, %82 : vector<16x24xf32>
    %c6_93 = arith.constant 6 : index
    %c0_94 = arith.constant 0 : index
    %84 = vector.load %arg10[%c6_93, %c0_94] : memref<22x24xf32, #tpu.memory_space<vmem>>, vector<16x24xf32>
    %c6_95 = arith.constant 6 : index
    %c0_96 = arith.constant 0 : index
    %c0_97 = arith.constant 0 : index
    %85 = vector.load %arg4[%c6_95, %c0_96, %c0_97] : memref<7x24x24xf32, #tpu.memory_space<vmem>>, vector<1x24x24xf32>
    %86 = vector.shape_cast %85 : vector<1x24x24xf32> to vector<24x24xf32>
    %cst_98 = arith.constant dense<0.000000e+00> : vector<16x24xf32>
    %87 = tpu.matmul %84, %86, %cst_98 {dimension_numbers = #tpu.dot_dimension_numbers<[1], [0], [0], [1], [0, 0, 1, 1], [], []>} : vector<16x24xf32>, vector<24x24xf32>, vector<16x24xf32> -> vector<16x24xf32>
    %88 = arith.addf %83, %87 : vector<16x24xf32>
    %c0_99 = arith.constant 0 : index
    %c0_100 = arith.constant 0 : index
    %89 = vector.load %arg5[%c0_99, %c0_100] : memref<1x24xf32, #tpu.memory_space<vmem>>, vector<1x24xf32>
    %90 = vector.broadcast %89 : vector<1x24xf32> to vector<16x24xf32>
    %91 = arith.addf %88, %90 : vector<16x24xf32>
    %cst_101 = arith.constant 0.000000e+00 : f32
    %92 = vector.broadcast %cst_101 : f32 to vector<16x24xf32>
    %93 = arith.maximumf %91, %92 : vector<16x24xf32>
    %cst_102 = arith.constant 0.000000e+00 : f32
    %94 = vector.broadcast %cst_102 : f32 to vector<8x8xf32>
    %c0_103 = arith.constant 0 : index
    %c0_104 = arith.constant 0 : index
    %95 = vector.load %arg11[%c0_103, %c0_104] : memref<21x24xf32, #tpu.memory_space<vmem>>, vector<16x24xf32>
    tpu.vector_store %arg11[%c0_103, %c0_104], %93 {strides = array<i32>} : memref<21x24xf32, #tpu.memory_space<vmem>>, vector<16x24xf32>,
    %96 = vector.extract_strided_slice %93 {offsets = [14, 0], sizes = [1, 24], strides = [1, 1]} : vector<16x24xf32> to vector<1x24xf32>
    %c16 = arith.constant 16 : index
    %c0_105 = arith.constant 0 : index
    %97 = vector.load %arg11[%c16, %c0_105] : memref<21x24xf32, #tpu.memory_space<vmem>>, vector<1x24xf32>
    tpu.vector_store %arg11[%c16, %c0_105], %96 {strides = array<i32>} : memref<21x24xf32, #tpu.memory_space<vmem>>, vector<1x24xf32>,
    %cst_106 = arith.constant 0.000000e+00 : f32
    %98 = vector.broadcast %cst_106 : f32 to vector<8x24xf32>
    %c0_107 = arith.constant 0 : index
    %c0_108 = arith.constant 0 : index
    %99 = tpu.strided_load %arg11[%c0_107, %c0_108] {strides = array<i32: 2, 1>} : memref<21x24xf32, #tpu.memory_space<vmem>>, vector<8x24xf32>
    %100 = arith.addf %98, %99 : vector<8x24xf32>
    %c1_109 = arith.constant 1 : index
    %c0_110 = arith.constant 0 : index
    %101 = tpu.strided_load %arg11[%c1_109, %c0_110] {strides = array<i32: 2, 1>} : memref<21x24xf32, #tpu.memory_space<vmem>>, vector<8x24xf32>
    %102 = arith.addf %100, %101 : vector<8x24xf32>
    %c2_111 = arith.constant 2 : index
    %c0_112 = arith.constant 0 : index
    %103 = tpu.strided_load %arg11[%c2_111, %c0_112] {strides = array<i32: 2, 1>} : memref<21x24xf32, #tpu.memory_space<vmem>>, vector<8x24xf32>
    %104 = arith.addf %102, %103 : vector<8x24xf32>
    %cst_113 = arith.constant 0.333333343 : f32
    %105 = vector.broadcast %cst_113 : f32 to vector<8x24xf32>
    %106 = arith.mulf %104, %105 : vector<8x24xf32>
    %c0_114 = arith.constant 0 : index
    %c0_115 = arith.constant 0 : index
    %c0_116 = arith.constant 0 : index
    %107 = vector.load %arg6[%c0_114, %c0_115, %c0_116] : memref<3x24x8xf32, #tpu.memory_space<vmem>>, vector<1x24x8xf32>
    %108 = vector.shape_cast %107 : vector<1x24x8xf32> to vector<24x8xf32>
    %cst_117 = arith.constant dense<0.000000e+00> : vector<8x8xf32>
    %109 = tpu.matmul %106, %108, %cst_117 {dimension_numbers = #tpu.dot_dimension_numbers<[1], [0], [0], [1], [0, 0, 1, 1], [], []>} : vector<8x24xf32>, vector<24x8xf32>, vector<8x8xf32> -> vector<8x8xf32>
    %110 = arith.addf %94, %109 : vector<8x8xf32>
    %c1_118 = arith.constant 1 : index
    %c0_119 = arith.constant 0 : index
    %111 = vector.load %arg11[%c1_118, %c0_119] : memref<21x24xf32, #tpu.memory_space<vmem>>, vector<16x24xf32>
    tpu.vector_store %arg11[%c1_118, %c0_119], %93 {strides = array<i32>} : memref<21x24xf32, #tpu.memory_space<vmem>>, vector<16x24xf32>,
    %112 = vector.extract_strided_slice %93 {offsets = [1, 0], sizes = [1, 24], strides = [1, 1]} : vector<16x24xf32> to vector<1x24xf32>
    %c0_120 = arith.constant 0 : index
    %c0_121 = arith.constant 0 : index
    %113 = vector.load %arg11[%c0_120, %c0_121] : memref<21x24xf32, #tpu.memory_space<vmem>>, vector<1x24xf32>
    tpu.vector_store %arg11[%c0_120, %c0_121], %112 {strides = array<i32>} : memref<21x24xf32, #tpu.memory_space<vmem>>, vector<1x24xf32>,
    %114 = vector.extract_strided_slice %93 {offsets = [14, 0], sizes = [1, 24], strides = [1, 1]} : vector<16x24xf32> to vector<1x24xf32>
    %c17 = arith.constant 17 : index
    %c0_122 = arith.constant 0 : index
    %115 = vector.load %arg11[%c17, %c0_122] : memref<21x24xf32, #tpu.memory_space<vmem>>, vector<1x24xf32>
    tpu.vector_store %arg11[%c17, %c0_122], %114 {strides = array<i32>} : memref<21x24xf32, #tpu.memory_space<vmem>>, vector<1x24xf32>,
    %116 = vector.extract_strided_slice %93 {offsets = [13, 0], sizes = [1, 24], strides = [1, 1]} : vector<16x24xf32> to vector<1x24xf32>
    %c18 = arith.constant 18 : index
    %c0_123 = arith.constant 0 : index
    %117 = vector.load %arg11[%c18, %c0_123] : memref<21x24xf32, #tpu.memory_space<vmem>>, vector<1x24xf32>
    tpu.vector_store %arg11[%c18, %c0_123], %116 {strides = array<i32>} : memref<21x24xf32, #tpu.memory_space<vmem>>, vector<1x24xf32>,
    %cst_124 = arith.constant 0.000000e+00 : f32
    %118 = vector.broadcast %cst_124 : f32 to vector<8x24xf32>
    %c0_125 = arith.constant 0 : index
    %c0_126 = arith.constant 0 : index
    %119 = tpu.strided_load %arg11[%c0_125, %c0_126] {strides = array<i32: 2, 1>} : memref<21x24xf32, #tpu.memory_space<vmem>>, vector<8x24xf32>
    %120 = arith.addf %118, %119 : vector<8x24xf32>
    %c1_127 = arith.constant 1 : index
    %c0_128 = arith.constant 0 : index
    %121 = tpu.strided_load %arg11[%c1_127, %c0_128] {strides = array<i32: 2, 1>} : memref<21x24xf32, #tpu.memory_space<vmem>>, vector<8x24xf32>
    %122 = arith.addf %120, %121 : vector<8x24xf32>
    %c2_129 = arith.constant 2 : index
    %c0_130 = arith.constant 0 : index
    %123 = tpu.strided_load %arg11[%c2_129, %c0_130] {strides = array<i32: 2, 1>} : memref<21x24xf32, #tpu.memory_space<vmem>>, vector<8x24xf32>
    %124 = arith.addf %122, %123 : vector<8x24xf32>
    %c3_131 = arith.constant 3 : index
    %c0_132 = arith.constant 0 : index
    %125 = tpu.strided_load %arg11[%c3_131, %c0_132] {strides = array<i32: 2, 1>} : memref<21x24xf32, #tpu.memory_space<vmem>>, vector<8x24xf32>
    %126 = arith.addf %124, %125 : vector<8x24xf32>
    %c4_133 = arith.constant 4 : index
    %c0_134 = arith.constant 0 : index
    %127 = tpu.strided_load %arg11[%c4_133, %c0_134] {strides = array<i32: 2, 1>} : memref<21x24xf32, #tpu.memory_space<vmem>>, vector<8x24xf32>
    %128 = arith.addf %126, %127 : vector<8x24xf32>
    %cst_135 = arith.constant 2.000000e-01 : f32
    %129 = vector.broadcast %cst_135 : f32 to vector<8x24xf32>
    %130 = arith.mulf %128, %129 : vector<8x24xf32>
    %c1_136 = arith.constant 1 : index
    %c0_137 = arith.constant 0 : index
    %c0_138 = arith.constant 0 : index
    %131 = vector.load %arg6[%c1_136, %c0_137, %c0_138] : memref<3x24x8xf32, #tpu.memory_space<vmem>>, vector<1x24x8xf32>
    %132 = vector.shape_cast %131 : vector<1x24x8xf32> to vector<24x8xf32>
    %cst_139 = arith.constant dense<0.000000e+00> : vector<8x8xf32>
    %133 = tpu.matmul %130, %132, %cst_139 {dimension_numbers = #tpu.dot_dimension_numbers<[1], [0], [0], [1], [0, 0, 1, 1], [], []>} : vector<8x24xf32>, vector<24x8xf32>, vector<8x8xf32> -> vector<8x8xf32>
    %134 = arith.addf %110, %133 : vector<8x8xf32>
    %c2_140 = arith.constant 2 : index
    %c0_141 = arith.constant 0 : index
    %135 = vector.load %arg11[%c2_140, %c0_141] : memref<21x24xf32, #tpu.memory_space<vmem>>, vector<16x24xf32>
    tpu.vector_store %arg11[%c2_140, %c0_141], %93 {strides = array<i32>} : memref<21x24xf32, #tpu.memory_space<vmem>>, vector<16x24xf32>,
    %136 = vector.extract_strided_slice %93 {offsets = [2, 0], sizes = [1, 24], strides = [1, 1]} : vector<16x24xf32> to vector<1x24xf32>
    %c0_142 = arith.constant 0 : index
    %c0_143 = arith.constant 0 : index
    %137 = vector.load %arg11[%c0_142, %c0_143] : memref<21x24xf32, #tpu.memory_space<vmem>>, vector<1x24xf32>
    tpu.vector_store %arg11[%c0_142, %c0_143], %136 {strides = array<i32>} : memref<21x24xf32, #tpu.memory_space<vmem>>, vector<1x24xf32>,
    %138 = vector.extract_strided_slice %93 {offsets = [1, 0], sizes = [1, 24], strides = [1, 1]} : vector<16x24xf32> to vector<1x24xf32>
    %c1_144 = arith.constant 1 : index
    %c0_145 = arith.constant 0 : index
    %139 = vector.load %arg11[%c1_144, %c0_145] : memref<21x24xf32, #tpu.memory_space<vmem>>, vector<1x24xf32>
    tpu.vector_store %arg11[%c1_144, %c0_145], %138 {strides = array<i32>} : memref<21x24xf32, #tpu.memory_space<vmem>>, vector<1x24xf32>,
    %140 = vector.extract_strided_slice %93 {offsets = [14, 0], sizes = [1, 24], strides = [1, 1]} : vector<16x24xf32> to vector<1x24xf32>
    %c18_146 = arith.constant 18 : index
    %c0_147 = arith.constant 0 : index
    %141 = vector.load %arg11[%c18_146, %c0_147] : memref<21x24xf32, #tpu.memory_space<vmem>>, vector<1x24xf32>
    tpu.vector_store %arg11[%c18_146, %c0_147], %140 {strides = array<i32>} : memref<21x24xf32, #tpu.memory_space<vmem>>, vector<1x24xf32>,
    %142 = vector.extract_strided_slice %93 {offsets = [13, 0], sizes = [1, 24], strides = [1, 1]} : vector<16x24xf32> to vector<1x24xf32>
    %c19_148 = arith.constant 19 : index
    %c0_149 = arith.constant 0 : index
    %143 = vector.load %arg11[%c19_148, %c0_149] : memref<21x24xf32, #tpu.memory_space<vmem>>, vector<1x24xf32>
    tpu.vector_store %arg11[%c19_148, %c0_149], %142 {strides = array<i32>} : memref<21x24xf32, #tpu.memory_space<vmem>>, vector<1x24xf32>,
    %144 = vector.extract_strided_slice %93 {offsets = [12, 0], sizes = [1, 24], strides = [1, 1]} : vector<16x24xf32> to vector<1x24xf32>
    %c20 = arith.constant 20 : index
    %c0_150 = arith.constant 0 : index
    %145 = vector.load %arg11[%c20, %c0_150] : memref<21x24xf32, #tpu.memory_space<vmem>>, vector<1x24xf32>
    tpu.vector_store %arg11[%c20, %c0_150], %144 {strides = array<i32>} : memref<21x24xf32, #tpu.memory_space<vmem>>, vector<1x24xf32>,
    %cst_151 = arith.constant 0.000000e+00 : f32
    %146 = vector.broadcast %cst_151 : f32 to vector<8x24xf32>
    %c0_152 = arith.constant 0 : index
    %c0_153 = arith.constant 0 : index
    %147 = tpu.strided_load %arg11[%c0_152, %c0_153] {strides = array<i32: 2, 1>} : memref<21x24xf32, #tpu.memory_space<vmem>>, vector<8x24xf32>
    %148 = arith.addf %146, %147 : vector<8x24xf32>
    %c1_154 = arith.constant 1 : index
    %c0_155 = arith.constant 0 : index
    %149 = tpu.strided_load %arg11[%c1_154, %c0_155] {strides = array<i32: 2, 1>} : memref<21x24xf32, #tpu.memory_space<vmem>>, vector<8x24xf32>
    %150 = arith.addf %148, %149 : vector<8x24xf32>
    %c2_156 = arith.constant 2 : index
    %c0_157 = arith.constant 0 : index
    %151 = tpu.strided_load %arg11[%c2_156, %c0_157] {strides = array<i32: 2, 1>} : memref<21x24xf32, #tpu.memory_space<vmem>>, vector<8x24xf32>
    %152 = arith.addf %150, %151 : vector<8x24xf32>
    %c3_158 = arith.constant 3 : index
    %c0_159 = arith.constant 0 : index
    %153 = tpu.strided_load %arg11[%c3_158, %c0_159] {strides = array<i32: 2, 1>} : memref<21x24xf32, #tpu.memory_space<vmem>>, vector<8x24xf32>
    %154 = arith.addf %152, %153 : vector<8x24xf32>
    %c4_160 = arith.constant 4 : index
    %c0_161 = arith.constant 0 : index
    %155 = tpu.strided_load %arg11[%c4_160, %c0_161] {strides = array<i32: 2, 1>} : memref<21x24xf32, #tpu.memory_space<vmem>>, vector<8x24xf32>
    %156 = arith.addf %154, %155 : vector<8x24xf32>
    %c5_162 = arith.constant 5 : index
    %c0_163 = arith.constant 0 : index
    %157 = tpu.strided_load %arg11[%c5_162, %c0_163] {strides = array<i32: 2, 1>} : memref<21x24xf32, #tpu.memory_space<vmem>>, vector<8x24xf32>
    %158 = arith.addf %156, %157 : vector<8x24xf32>
    %c6_164 = arith.constant 6 : index
    %c0_165 = arith.constant 0 : index
    %159 = tpu.strided_load %arg11[%c6_164, %c0_165] {strides = array<i32: 2, 1>} : memref<21x24xf32, #tpu.memory_space<vmem>>, vector<8x24xf32>
    %160 = arith.addf %158, %159 : vector<8x24xf32>
    %cst_166 = arith.constant 0.142857149 : f32
    %161 = vector.broadcast %cst_166 : f32 to vector<8x24xf32>
    %162 = arith.mulf %160, %161 : vector<8x24xf32>
    %c2_167 = arith.constant 2 : index
    %c0_168 = arith.constant 0 : index
    %c0_169 = arith.constant 0 : index
    %163 = vector.load %arg6[%c2_167, %c0_168, %c0_169] : memref<3x24x8xf32, #tpu.memory_space<vmem>>, vector<1x24x8xf32>
    %164 = vector.shape_cast %163 : vector<1x24x8xf32> to vector<24x8xf32>
    %cst_170 = arith.constant dense<0.000000e+00> : vector<8x8xf32>
    %165 = tpu.matmul %162, %164, %cst_170 {dimension_numbers = #tpu.dot_dimension_numbers<[1], [0], [0], [1], [0, 0, 1, 1], [], []>} : vector<8x24xf32>, vector<24x8xf32>, vector<8x8xf32> -> vector<8x8xf32>
    %166 = arith.addf %134, %165 : vector<8x8xf32>
    %c0_171 = arith.constant 0 : index
    %c0_172 = arith.constant 0 : index
    %167 = vector.load %arg7[%c0_171, %c0_172] : memref<1x8xf32, #tpu.memory_space<vmem>>, vector<1x8xf32>
    %168 = vector.broadcast %167 : vector<1x8xf32> to vector<8x8xf32>
    %169 = arith.addf %166, %168 : vector<8x8xf32>
    %c0_173 = arith.constant 0 : index
    %c0_174 = arith.constant 0 : index
    %c0_175 = arith.constant 0 : index
    %170 = vector.load %arg8[%c0_173, %c0_174, %c0_175] : memref<1x8x8xf32, #tpu.memory_space<vmem>>, vector<1x8x8xf32>
    %171 = vector.shape_cast %170 : vector<1x8x8xf32> to vector<8x8xf32>
    %172 = vector.shape_cast %169 : vector<8x8xf32> to vector<1x8x8xf32>
    tpu.vector_store %arg8[%c0_173, %c0_174, %c0_175], %172 {strides = array<i32>} : memref<1x8x8xf32, #tpu.memory_space<vmem>>, vector<1x8x8xf32>,
    return
  }
  func.func @transform_0(%arg0: i32) -> (i32, i32, i32) {
    %c0_i32 = arith.constant 0 : i32
    %c0_i32_0 = arith.constant 0 : i32
    %c0_i32_1 = arith.constant 0 : i32
    return %arg0, %c0_i32, %c0_i32_0 : i32, i32, i32
  }
  func.func @transform_1(%arg0: i32) -> (i32, i32, i32) {
    %c0_i32 = arith.constant 0 : i32
    %c0_i32_0 = arith.constant 0 : i32
    %c0_i32_1 = arith.constant 0 : i32
    %c0_i32_2 = arith.constant 0 : i32
    return %c0_i32, %c0_i32_0, %c0_i32_1 : i32, i32, i32
  }
  func.func @transform_2(%arg0: i32) -> (i32, i32) {
    %c0_i32 = arith.constant 0 : i32
    %c0_i32_0 = arith.constant 0 : i32
    %c0_i32_1 = arith.constant 0 : i32
    return %c0_i32, %c0_i32_0 : i32, i32
  }
  func.func @transform_3(%arg0: i32) -> (i32, i32, i32) {
    %c0_i32 = arith.constant 0 : i32
    %c0_i32_0 = arith.constant 0 : i32
    %c0_i32_1 = arith.constant 0 : i32
    %c0_i32_2 = arith.constant 0 : i32
    return %c0_i32, %c0_i32_0, %c0_i32_1 : i32, i32, i32
  }
  func.func @transform_4(%arg0: i32) -> (i32, i32) {
    %c0_i32 = arith.constant 0 : i32
    %c0_i32_0 = arith.constant 0 : i32
    %c0_i32_1 = arith.constant 0 : i32
    return %c0_i32, %c0_i32_0 : i32, i32
  }
  func.func @transform_5(%arg0: i32) -> (i32, i32, i32) {
    %c0_i32 = arith.constant 0 : i32
    %c0_i32_0 = arith.constant 0 : i32
    %c0_i32_1 = arith.constant 0 : i32
    %c0_i32_2 = arith.constant 0 : i32
    return %c0_i32, %c0_i32_0, %c0_i32_1 : i32, i32, i32
  }
  func.func @transform_6(%arg0: i32) -> (i32, i32) {
    %c0_i32 = arith.constant 0 : i32
    %c0_i32_0 = arith.constant 0 : i32
    %c0_i32_1 = arith.constant 0 : i32
    return %c0_i32, %c0_i32_0 : i32, i32
  }
  func.func @transform_7(%arg0: i32) -> (i32, i32, i32) {
    %c0_i32 = arith.constant 0 : i32
    %c0_i32_0 = arith.constant 0 : i32
    %c0_i32_1 = arith.constant 0 : i32
    return %arg0, %c0_i32, %c0_i32_0 : i32, i32, i32
  }
}

</mosaic_0001>

<bundles_post_ra>
// kernel: inception_block_forward.1
= control target key start
LH: loop header
LB: loop body
LE: loop exit
PB: predicated region body
PF: predicated region fallthrough
CT: control target
= control target key end

     0   :  { %s2245_s24 = smov 0   ;;  %s2463_s0 = inlined_call_operand.vmem [shape: f32[2,16,4], index: 0, kind: input, shape index: {}]   ;;  %s2464_s1 = inlined_call_operand.vmem [shape: f32[7,4,24], index: 1, kind: input, shape index: {}]   ;;  %s2465_s2 = inlined_call_operand.vmem [shape: f32[1,24], index: 2, kind: input, shape index: {}]   ;;  %s2466_s3 = inlined_call_operand.vmem [shape: f32[7,24,24], index: 3, kind: input, shape index: {}]   ;;  %s2467_s4 = inlined_call_operand.vmem [shape: f32[1,24], index: 4, kind: input, shape index: {}]   ;;  %s2468_s5 = inlined_call_operand.vmem [shape: f32[3,24,8], index: 5, kind: input, shape index: {}]   ;;  %s2469_s6 = inlined_call_operand.vmem [shape: f32[1,8], index: 6, kind: input, shape index: {}]   ;;  %s2470_s7 = inlined_call_operand.vmem [shape: f32[2,8,8], index: 7, kind: output, shape index: {}]  }
   0x1 LB: > { %s1910_s25 = sadd.s32 4294967295, %s2201_s24   ;;  %p1914_p0 = scmp.ge.s32.totalorder %s2201_s24, 1  ;;  %s2201_s24 = sphi %s2245_s24, %s17_s24  }
   0x2   : > { %p237_p1 = scmp.lt.s32.totalorder %s2201_s24, 3 }
   0x4   : > { %p238_p2 = pnand %p1914_p0, %p237_p1 }
   0x5   : > { %p268_p3 = scmp.lt.s32.totalorder (!%p238_p2), %s1910_s25, 1 }
   0x6   : > { %241 = sbr.rel (%p238_p2) target bundleno = 712 (0x2c8), region = 48 }
   0xb   : > { %v1918_v0 = vld [vmem:[%s2464_s1 + $0x4] sm:$0xf]  ;;  %vm298_vm0 = vcmask 1043456   ;;  %v287_v1 = vld [vmem:[%s2464_s1] sm:$0xf]  ;;  %vm277_vm1 = vcmask 26624  }
   0xc   : > { %2060 = vmatprep.subr.msk.mxu0 %vm298_vm0, %v1918_v0  ;;  %2065 = vmatprep.subr.msk.mxu1 %vm298_vm0, %v287_v1  ;;  %v1925_v2 = vld [vmem:[%s2464_s1 + $0x8] sm:$0xf]  ;;  %s2472_s25 = smov (!%p268_p3, %s1910_s25), 1  ;;  %v2203_v3 = vmov 0.0   ;;  %v1929_v4 = vld [vmem:[%s2464_s1 + $0xc] sm:$0xf] }
   0xd   : > { %2061 = vmatpush3.msk.msra.mxu0 %vm298_vm0, %v1918_v0  ;;  %278 = vst.msk [vmem:[#allocation2] sm:$0x7] %vm277_vm1, %v2203_v3  ;;  %279 = vst.msk [vmem:[#allocation2 + $0x13] sm:$0x7] %vm277_vm1, %v2203_v3  ;;  %2066 = vmatpush3.msk.msra.mxu1 %vm298_vm0, %v287_v1  ;;  %s1991_s11 = sshll.u32 %s2472_s25, 4  ;;  %vm282_vm2 = vcmask 31744  }
   0xe   : > { %2070 = vmatprep.subr.msk.mxu0 %vm298_vm0, %v1925_v2  ;;  %2075 = vmatprep.subr.msk.mxu1 %vm298_vm0, %v1929_v4  ;;  %s272_s14 = scalar_lea.vmem %s2463_s0, %s1991_s11  ;;  %v1933_v13 = vld [vmem:[%s2464_s1 + $0x10] sm:$0xf]  ;;  %v1937_v14 = vld [vmem:[%s2464_s1 + $0x14] sm:$0xf]  ;;  %v1941_v19 = vld [vmem:[%s2464_s1 + $0x18] sm:$0xf] }
   0xf   : > { %v280_v5 = vld [vmem:[%s272_s14] sm:$0xff]  ;;  %v281_v6 = vld [vmem:[%s272_s14 + $0x8] sm:$0xff]  ;;  %vm922_vm3 = vcmask 190464   ;;  %v932_v25 = vld [vmem:[%s2466_s3 + $0x10] sm:$0xff]  ;;  %vm925_vm4 = vcmask 195584   ;;  %vm2204_vm5 = vmmov 0  }
  0x10   : > { %283 = vst.msk [vmem:[#allocation2 + $0x3] sm:$0xff] %vm282_vm2, %v280_v5  ;;  %284 = vst.msk [vmem:[#allocation2 + $0xb] sm:$0xff] %vm282_vm2, %v281_v6  ;;  %v1948_v24 = vld [vmem:[%s2466_s3 + $0x28] sm:$0xff]  ;;  %v1947_v26 = vld [vmem:[%s2466_s3 + $0x20] sm:$0xff]  ;;  %vm1559_vm6 = vcmask 194566   ;;  %vm1750_vm7 = vcmask 192516  }
  0x11   : > { %923 = vst.msk [vmem:[#allocation3] sm:$0x7] %vm922_vm3, %v2203_v3  ;;  %924 = vst.msk [vmem:[#allocation3 + $0x13] sm:$0x7] %vm922_vm3, %v2203_v3  ;;  %v931_v27 = vld [vmem:[%s2466_s3 + $0x8] sm:$0xff]  ;;  %v1946_v28 = vld [vmem:[%s2466_s3 + $0x18] sm:$0xff] }
  0x12   : > { %v930_v29 = vld [vmem:[%s2466_s3] sm:$0xff]  ;;  %v1960_v31 = vld [vmem:[%s2466_s3 + $0x58] sm:$0xff]  ;;  %v1959_v5 = vld [vmem:[%s2466_s3 + $0x50] sm:$0xff]  ;;  %vm1578_vm8 = vcmask 193541   ;;  %vm1575_vm9 = vcmask 189441   ;;  %vm1745_vm10 = vcmask 190466  }
  0x13   : > { %v1955_v30 = vld [vmem:[%s2466_s3 + $0x40] sm:$0xff]  ;;  %s1917_s22 = sshll.u32 %s2472_s25, 3  ;;  %vm1855_vm11 = vcmask 64512  }
  0x14   : > { %v1945_v54 = vld [vmem:[%s2465_s2] ss:$0 sm:$0xff]  ;;  %s276_s29 = scalar_lea.vmem %s2470_s7, %s1917_s22 }
  0x17   : > { %v288_v7 = vld [vmem:[#allocation2 + $0x1] sm:$0xff]  ;;  %v289_v9 = vld [vmem:[#allocation2 + $0x9] sm:$0xff] }
  0x18   : > { %v285_v8 = vld [vmem:[#allocation2] sm:$0xff]  ;;  %2062 = vmatprep.mubr.msk.f32.mxu0 %vm282_vm2, %v288_v7  ;;  %v286_v10 = vld [vmem:[#allocation2 + $0x8] sm:$0xff] }
  0x19   : > { %2067 = vmatprep.mubr.msk.f32.mxu1 %vm282_vm2, %v285_v8  ;;  %v461_v11 = vld [vmem:[#allocation2 + $0x2] sm:$0xff]  ;;  %2063 = vmatmul.mubr.msk.f32.vlgmr.msra.gmra.mxu0 %vm282_vm2, %v289_v9  ;;  %v462_v15 = vld [vmem:[#allocation2 + $0xa] sm:$0xff] }
  0x1a   : > { %v551_v12 = vld [vmem:[#allocation2 + $0x3] sm:$0xff]  ;;  %2068 = vmatmul.mubr.msk.f32.vlgmr.msra.gmra.mxu1 %vm282_vm2, %v286_v10  ;;  %2071 = vmatpush3.msk.msra.mxu0 %vm298_vm0, %v1925_v2  ;;  %v552_v16 = vld [vmem:[#allocation2 + $0xb] sm:$0xff] }
  0x1b   : > { %2076 = vmatpush3.msk.msra.mxu1 %vm298_vm0, %v1929_v4  ;;  %2072 = vmatprep.mubr.msk.f32.mxu0 %vm282_vm2, %v461_v11  ;;  %v641_v17 = vld [vmem:[#allocation2 + $0x4] sm:$0xff]  ;;  %v642_v20 = vld [vmem:[#allocation2 + $0xc] sm:$0xff]  ;;  %v1954_v4 = vld [vmem:[%s2466_s3 + $0x38] sm:$0xff] }
  0x1c   : > { %2077 = vmatprep.mubr.msk.f32.mxu1 %vm282_vm2, %v551_v12  ;;  %2080 = vmatprep.subr.msk.mxu0 %vm298_vm0, %v1933_v13  ;;  %v731_v18 = vld [vmem:[#allocation2 + $0x5] sm:$0xff]  ;;  %v732_v21 = vld [vmem:[#allocation2 + $0xd] sm:$0xff] }
  0x1d   : > { %2085 = vmatprep.subr.msk.mxu1 %vm298_vm0, %v1937_v14  ;;  %2073 = vmatmul.mubr.msk.f32.vlgmr.msra.gmra.mxu0 %vm282_vm2, %v462_v15  ;;  %v821_v22 = vld [vmem:[#allocation2 + $0x6] sm:$0xff]  ;;  %v822_v23 = vld [vmem:[#allocation2 + $0xe] sm:$0xff] }
  0x1e   : > { %2078 = vmatmul.mubr.msk.f32.vlgmr.msra.gmra.mxu1 %vm282_vm2, %v552_v16  ;;  %2081 = vmatpush3.msk.msra.mxu0 %vm298_vm0, %v1933_v13  ;;  %v1953_v8 = vld [vmem:[%s2466_s3 + $0x30] sm:$0xff]  ;;  %v1958_v9 = vld [vmem:[%s2466_s3 + $0x48] sm:$0xff]  ;;  %v1969_v16 = vld [vmem:[%s2466_s3 + $0x80] sm:$0xff] }
  0x1f   : > { %2086 = vmatpush3.msk.msra.mxu1 %vm298_vm0, %v1937_v14  ;;  %2082 = vmatprep.mubr.msk.f32.mxu0 %vm282_vm2, %v641_v17  ;;  %v1965_v10 = vld [vmem:[%s2466_s3 + $0x70] sm:$0xff]  ;;  %v1970_v11 = vld [vmem:[%s2466_s3 + $0x88] sm:$0xff] }
  0x20   : > { %2087 = vmatprep.mubr.msk.f32.mxu1 %vm282_vm2, %v731_v18  ;;  %2090 = vmatprep.subr.msk.mxu0 %vm298_vm0, %v1941_v19  ;;  %v1964_v15 = vld [vmem:[%s2466_s3 + $0x68] sm:$0xff]  ;;  %v1963_v18 = vld [vmem:[%s2466_s3 + $0x60] sm:$0xff] }
  0x21   : > { %2083 = vmatmul.mubr.msk.f32.vlgmr.msra.gmra.mxu0 %vm282_vm2, %v642_v20  ;;  %2095 = vmatprep.subr.mxu1 %v1948_v24  ;;  %v1975_v20 = vld [vmem:[%s2466_s3 + $0xa0] sm:$0xff] }
  0x22   : > { %2088 = vmatmul.mubr.msk.f32.vlgmr.msra.gmra.mxu1 %vm282_vm2, %v732_v21  ;;  %2091 = vmatpush3.msk.msra.mxu0 %vm298_vm0, %v1941_v19  ;;  %v1968_v19 = vld [vmem:[%s2466_s3 + $0x78] sm:$0xff] }
  0x23   : > { %2092 = vmatprep.mubr.msk.f32.mxu0 %vm282_vm2, %v821_v22  ;;  %2104 = vmatprep.subr.mxu0 %v932_v25 }
  0x24   : > { %2096 = vmatpush3.msra.mxu1 %v1948_v24  ;;  %v1974_v24 = vld [vmem:[%s2466_s3 + $0x98] sm:$0xff] }
  0x25   : > { %2093 = vmatmul.mubr.msk.f32.vlgmr.msra.gmra.mxu0 %vm282_vm2, %v822_v23  ;;  %2097 = vmatprep.subr.mxu1 %v1947_v26 }
  0x26   : > { %2105 = vmatpush3.msra.mxu0 %v932_v25  ;;  %2098 = vmatpush3.msra.mxu1 %v1947_v26  ;;  %v1973_v25 = vld [vmem:[%s2466_s3 + $0x90] sm:$0xff] }
  0x27   : > { %2106 = vmatprep.subr.mxu0 %v931_v27  ;;  %2099 = vmatprep.subr.mxu1 %v1946_v28 }
  0x28   : > { %2107 = vmatpush3.msra.mxu0 %v931_v27  ;;  %2100 = vmatpush3.msra.mxu1 %v1946_v28  ;;  %v1572_v27 = vld [vmem:[%s2468_s5 + $0x10] sm:$0xff]  ;;  %v1571_v28 = vld [vmem:[%s2468_s5 + $0x8] sm:$0xff] }
  0x29   : > { %2108 = vmatprep.subr.mxu0 %v930_v29  ;;  %2113 = vmatprep.subr.mxu1 %v1955_v30 }
  0x2a   : > { %2109 = vmatpush3.msra.mxu0 %v930_v29  ;;  %v1570_v29 = vld [vmem:[%s2468_s5] sm:$0xff] }
  0x2b   : > { %2122 = vmatprep.subr.mxu0 %v1960_v31 }
  0xd9   : > { %v2064_v32 = vpop.f32.mrf.mxu0 }
  0xda   : > { %v2069_v33 = vpop.f32.mrf.mxu1 }
  0xdb   : > { %v368_v34 = vpop.f32.mrf.mxu0  ;;  %v458_v36 = vadd.f32 %v2069_v33, %v2064_v32  ;;  %v1979_v32 = vld [vmem:[%s2468_s5 + $0x18] sm:$0xff] }
  0xdc   : > { %v452_v35 = vpop.f32.mrf.mxu1 }
  0xdd   : > { %v2074_v37 = vpop.f32.mrf.mxu0  ;;  %v453_v39 = vadd.f32 %v452_v35, %v368_v34 }
  0xde   : > { %v2079_v38 = vpop.f32.mrf.mxu1  ;;  %v550_v40 = vadd.f32 %v2074_v37, %v458_v36 }
  0xdf   : > { %v540_v41 = vpop.f32.mrf.mxu0 }
  0xe0   : > { %v630_v42 = vpop.f32.mrf.mxu1  ;;  %v640_v43 = vadd.f32 %v2079_v38, %v550_v40  ;;  %v549_v44 = vadd.f32 %v540_v41, %v453_v39 }
  0xe1   : > { %v2084_v45 = vpop.f32.mrf.mxu0 }
  0xe2   : > { %v2089_v46 = vpop.f32.mrf.mxu1  ;;  %v639_v47 = vadd.f32 %v630_v42, %v549_v44  ;;  %v730_v48 = vadd.f32 %v2084_v45, %v640_v43 }
  0xe3   : > { %v720_v49 = vpop.f32.mrf.mxu0 }
  0xe4   : > { %v820_v50 = vadd.f32 %v2089_v46, %v730_v48  ;;  %v729_v51 = vadd.f32 %v720_v49, %v639_v47  ;;  %v810_v52 = vpop.f32.mrf.mxu1 }
  0xe5   : > { %v2094_v53 = vpop.f32.mrf.mxu0 }
  0xe6   : > { %v819_v55 = vadd.f32 %v810_v52, %v729_v51  ;;  %v910_v56 = vadd.f32 %v2094_v53, %v820_v50 }
  0xe7   : > { %v900_v57 = vpop.f32.mrf.mxu0 }
  0xe8   : > { %v919_v58 = vadd.f32 %v1945_v54, %v910_v56  ;;  %v909_v59 = vadd.f32 %v900_v57, %v819_v55  ;;  %v1978_v55 = vld [vmem:[%s2467_s4] ss:$0 sm:$0xff] }
  0xea   : > { %v921_v60 = vmax.f32 %v919_v58, 0.0  ;;  %v918_v61 = vadd.f32 %v1945_v54, %v909_v59 }
  0xec   : > { %927 = vst.msk [vmem:[#allocation3 + $0xb] sm:$0xff] %vm925_vm4, %v921_v60  ;;  %v920_v62 = vmax.f32 %v918_v61, 0.0 }
  0xee   : > { %926 = vst.msk [vmem:[#allocation3 + $0x3] sm:$0xff] %vm925_vm4, %v920_v62 }
  0xf3   : > { %v1191_v13 = vld [vmem:[#allocation3 + $0xb] sm:$0xff] }
  0xf4   : > { %v1280_v21 = vld [vmem:[#allocation3 + $0xc] sm:$0xff] }
  0xf5   : > { %v933_v63 = vld [vmem:[#allocation3 + $0x1] sm:$0xff]  ;;  %v934_v1 = vld [vmem:[#allocation3 + $0x9] sm:$0xff] }
  0xf6   : > { %v928_v0 = vld [vmem:[#allocation3] sm:$0xff]  ;;  %2101 = vmatprep.mubr.msk.f32.mxu1 %vm925_vm4, %v933_v63  ;;  %v929_v2 = vld [vmem:[#allocation3 + $0x8] sm:$0xff] }
  0xf7   : > { %2110 = vmatprep.mubr.msk.f32.mxu0 %vm925_vm4, %v928_v0  ;;  %2102 = vmatmul.mubr.msk.f32.vlgmr.msra.gmra.mxu1 %vm925_vm4, %v934_v1  ;;  %v1101_v6 = vld [vmem:[#allocation3 + $0x2] sm:$0xff]  ;;  %v1102_v12 = vld [vmem:[#allocation3 + $0xa] sm:$0xff] }
  0xf8   : > { %2111 = vmatmul.mubr.msk.f32.vlgmr.msra.gmra.mxu0 %vm925_vm4, %v929_v2  ;;  %2114 = vmatpush3.msra.mxu1 %v1955_v30  ;;  %v1190_v7 = vld [vmem:[#allocation3 + $0x3] sm:$0xff]  ;;  %v1369_v22 = vld [vmem:[#allocation3 + $0xd] sm:$0xff] }
  0xf9   : > { %2123 = vmatpush3.msra.mxu0 %v1960_v31  ;;  %2115 = vmatprep.subr.mxu1 %v1954_v4  ;;  %v1279_v14 = vld [vmem:[#allocation3 + $0x4] sm:$0xff]  ;;  %v1458_v26 = vld [vmem:[#allocation3 + $0xe] sm:$0xff] }
  0xfa   : > { %2119 = vmatprep.mubr.msk.f32.mxu1 %vm925_vm4, %v1101_v6  ;;  %2124 = vmatprep.subr.mxu0 %v1959_v5  ;;  %v1368_v17 = vld [vmem:[#allocation3 + $0x5] sm:$0xff]  ;;  %v1981_v30 = vld [vmem:[%s2468_s5 + $0x28] sm:$0xff] }
  0xfb   : > { %2128 = vmatprep.mubr.msk.f32.mxu0 %vm925_vm4, %v1190_v7  ;;  %2116 = vmatpush3.msra.mxu1 %v1954_v4  ;;  %v1457_v23 = vld [vmem:[#allocation3 + $0x6] sm:$0xff] }
  0xfc   : > { %2125 = vmatpush3.msra.mxu0 %v1959_v5  ;;  %2117 = vmatprep.subr.mxu1 %v1953_v8  ;;  %v1980_v31 = vld [vmem:[%s2468_s5 + $0x20] sm:$0xff] }
  0xfd   : > { %2126 = vmatprep.subr.mxu0 %v1958_v9  ;;  %2118 = vmatpush3.msra.mxu1 %v1953_v8 }
  0xfe   : > { %2127 = vmatpush3.msra.mxu0 %v1958_v9  ;;  %2120 = vmatmul.mubr.msk.f32.vlgmr.msra.gmra.mxu1 %vm925_vm4, %v1102_v12 }
  0xff   : > { %2129 = vmatmul.mubr.msk.f32.vlgmr.msra.gmra.mxu0 %vm925_vm4, %v1191_v13  ;;  %2131 = vmatprep.subr.mxu1 %v1965_v10 }
 0x100   : > { %2140 = vmatprep.subr.mxu0 %v1970_v11  ;;  %2132 = vmatpush3.msra.mxu1 %v1965_v10 }
 0x101   : > { %2137 = vmatprep.mubr.msk.f32.mxu1 %vm925_vm4, %v1279_v14  ;;  %2141 = vmatpush3.msra.mxu0 %v1970_v11 }
 0x102   : > { %2146 = vmatprep.mubr.msk.f32.mxu0 %vm925_vm4, %v1368_v17  ;;  %2133 = vmatprep.subr.mxu1 %v1964_v15 }
 0x103   : > { %2142 = vmatprep.subr.mxu0 %v1969_v16  ;;  %2134 = vmatpush3.msra.mxu1 %v1964_v15 }
 0x104   : > { %2143 = vmatpush3.msra.mxu0 %v1969_v16  ;;  %2135 = vmatprep.subr.mxu1 %v1963_v18  ;;  %v1986_v16 = vld [vmem:[%s2468_s5 + $0x40] sm:$0xff] }
 0x105   : > { %2144 = vmatprep.subr.mxu0 %v1968_v19  ;;  %2136 = vmatpush3.msra.mxu1 %v1963_v18 }
 0x106   : > { %2145 = vmatpush3.msra.mxu0 %v1968_v19  ;;  %2138 = vmatmul.mubr.msk.f32.vlgmr.msra.gmra.mxu1 %vm925_vm4, %v1280_v21  ;;  %v1985_v21 = vld [vmem:[%s2468_s5 + $0x38] sm:$0xff] }
 0x107   : > { %2147 = vmatmul.mubr.msk.f32.vlgmr.msra.gmra.mxu0 %vm925_vm4, %v1369_v22  ;;  %2149 = vmatprep.subr.mxu1 %v1975_v20 }
 0x108   : > { %2155 = vmatprep.mubr.msk.f32.mxu1 %vm925_vm4, %v1457_v23  ;;  %2150 = vmatpush3.msra.mxu1 %v1975_v20 }
 0x109   : > { %2158 = vmatprep.subr.mxu0 %v2203_v3  ;;  %2151 = vmatprep.subr.mxu1 %v1974_v24 }
 0x10a   : > { %2152 = vmatpush3.msra.mxu1 %v1974_v24  ;;  %2164 = vmatprep.mubr.msk.f32.mxu0 %vm2204_vm5, %v2203_v3  ;;  %v1984_v24 = vld [vmem:[%s2468_s5 + $0x30] sm:$0xff] }
 0x10b   : > { %2153 = vmatprep.subr.mxu1 %v1973_v25  ;;  %2159 = vmatpush3.msra.mxu0 %v1981_v30 }
 0x10c   : > { %2154 = vmatpush3.msra.mxu1 %v1973_v25  ;;  %2160 = vmatprep.subr.mxu0 %v2203_v3 }
 0x10d   : > { %2156 = vmatmul.mubr.msk.f32.vlgmr.msra.gmra.mxu1 %vm925_vm4, %v1458_v26  ;;  %2167 = vmatprep.subr.mxu1 %v2203_v3 }
 0x10e   : > { %2168 = vmatpush3.msra.mxu1 %v1572_v27  ;;  %2173 = vmatprep.mubr.msk.f32.mxu1 %vm2204_vm5, %v2203_v3 }
 0x10f   : > { %2169 = vmatprep.subr.mxu1 %v2203_v3  ;;  %2161 = vmatpush3.msra.mxu0 %v1980_v31 }
 0x110   : > { %2170 = vmatpush3.msra.mxu1 %v1571_v28  ;;  %2162 = vmatprep.subr.mxu0 %v2203_v3 }
 0x111   : > { %2171 = vmatprep.subr.mxu1 %v2203_v3  ;;  %2163 = vmatpush3.msra.mxu0 %v1979_v32 }
 0x112   : > { %2172 = vmatpush3.msra.mxu1 %v1570_v29  ;;  %2176 = vmatprep.subr.mxu0 %v2203_v3 }
 0x1b7   : > { %v2103_v33 = vpop.f32.mrf.mxu1 }
 0x1b8   : > { %v2112_v35 = vpop.f32.mrf.mxu0 }
 0x1b9   : > { %v1011_v34 = vpop.f32.mrf.mxu1  ;;  %v1098_v38 = vadd.f32 %v2112_v35, %v2103_v33 }
 0x1ba   : > { %v1092_v37 = vpop.f32.mrf.mxu0 }
 0x1bb   : > { %v1093_v40 = vadd.f32 %v1092_v37, %v1011_v34 }
 0x1be   : > { %v2121_v36 = vpop.f32.mrf.mxu1 }
 0x1bf   : > { %v1189_v41 = vadd.f32 %v2121_v36, %v1098_v38  ;;  %v2130_v42 = vpop.f32.mrf.mxu0 }
 0x1c0   : > { %v1179_v39 = vpop.f32.mrf.mxu1 }
 0x1c1   : > { %v1188_v43 = vadd.f32 %v1179_v39, %v1093_v40  ;;  %v1278_v44 = vadd.f32 %v2130_v42, %v1189_v41  ;;  %v1268_v46 = vpop.f32.mrf.mxu0 }
 0x1c3   : > { %v1277_v47 = vadd.f32 %v1268_v46, %v1188_v43 }
 0x1c6   : > { %v2139_v45 = vpop.f32.mrf.mxu1 }
 0x1c7   : > { %v1367_v48 = vadd.f32 %v2139_v45, %v1278_v44  ;;  %v2148_v50 = vpop.f32.mrf.mxu0 }
 0x1c8   : > { %v1357_v49 = vpop.f32.mrf.mxu1 }
 0x1c9   : > { %v1366_v51 = vadd.f32 %v1357_v49, %v1277_v47  ;;  %v1456_v52 = vadd.f32 %v2148_v50, %v1367_v48  ;;  %v1446_v53 = vpop.f32.mrf.mxu0 }
 0x1cb   : > { %v1455_v56 = vadd.f32 %v1446_v53, %v1366_v51 }
 0x1cd   : > { %v2157_v54 = vpop.f32.mrf.mxu1 }
 0x1ce   : > { %v1545_v57 = vadd.f32 %v2157_v54, %v1456_v52 }
 0x1cf   : > { %v1535_v58 = vpop.f32.mrf.mxu1 }
 0x1d0   : > { %v1554_v59 = vadd.f32 %v1978_v55, %v1545_v57  ;;  %v1544_v60 = vadd.f32 %v1535_v58, %v1455_v56 }
 0x1d2   : > { %v1556_v61 = vmax.f32 %v1554_v59, 0.0  ;;  %v1553_v62 = vadd.f32 %v1978_v55, %v1544_v60 }
 0x1d4   : > { %1558 = vst.msk [vmem:[#allocation4 + $0x8] sm:$0xff] %vm925_vm4, %v1556_v61  ;;  %v1555_v63 = vmax.f32 %v1553_v62, 0.0 }
 0x1d5   : > { %1577 = vst.msk [vmem:[#allocation4 + $0xb] sm:$0x40] %vm1559_vm6, %v1556_v61  ;;  %1560 = vst.msk [vmem:[#allocation4 + $0xa] sm:$0x40] %vm1559_vm6, %v1556_v61 }
 0x1d6   : > { %1751 = vst.msk [vmem:[#allocation4 + $0x10] sm:$0x10] %vm1750_vm7, %v1556_v61 }
 0x1d7   : > { %1579 = vst.msk [vmem:[#allocation4 + $0xd] sm:$0x20] %vm1578_vm8, %v1556_v61  ;;  %1749 = vst.msk [vmem:[#allocation4 + $0xe] sm:$0x20] %vm1578_vm8, %v1556_v61 }
 0x1d8   : > { %1557 = vst.msk [vmem:[#allocation4] sm:$0xff] %vm925_vm4, %v1555_v63 }
 0x1df   : > { %v1561_v0 = vld [vmem:[#allocation4] ss:$2 sm:$0xff]  ;;  %v1564_v1 = vld [vmem:[#allocation4 + $0x1] ss:$2 sm:$0xff] }
 0x1e0   : > { %v1567_v2 = vld [vmem:[#allocation4 + $0x2] ss:$2 sm:$0xff]  ;;  %1576 = vst.msk [vmem:[#allocation4 - $0x1] sm:$0x2] %vm1575_vm9, %v1555_v63  ;;  %v1565_v4 = vadd.f32 %v1564_v1, %v1561_v0 }
 0x1e1   : > { %1573 = vst.msk [vmem:[#allocation4 + $0x1] sm:$0xff] %vm925_vm4, %v1555_v63  ;;  %1574 = vst.msk [vmem:[#allocation4 + $0x9] sm:$0xff] %vm925_vm4, %v1556_v61 }
 0x1e2   : > { %v1568_v5 = vadd.f32 %v1567_v2, %v1565_v4 }
 0x1e4   : > { %v1569_v6 = vmul.f32 0.33333334, %v1568_v5 }
 0x1e6   : > { %2174 = vmatmul.mubr.msk.f32.vlgmr.msra.gmra.mxu1 %vm925_vm4, %v1569_v6 }
 0x1e8   : > { %v1582_v7 = vld [vmem:[#allocation4 + $0x1] ss:$2 sm:$0xff]  ;;  %v1580_v8 = vld [vmem:[#allocation4] ss:$2 sm:$0xff] }
 0x1e9   : > { %v1584_v9 = vld [vmem:[#allocation4 + $0x2] ss:$2 sm:$0xff]  ;;  %1747 = vst.msk [vmem:[#allocation4] sm:$0x2] %vm1575_vm9, %v1555_v63  ;;  %v1583_v10 = vadd.f32 %v1582_v7, %v1580_v8  ;;  %v1587_v11 = vld [vmem:[#allocation4 + $0x3] ss:$2 sm:$0xff] }
 0x1ea   : > { %v1590_v12 = vld [vmem:[#allocation4 + $0x4] ss:$2 sm:$0xff]  ;;  %1746 = vst.msk [vmem:[#allocation4 - $0x2] sm:$0x4] %vm1745_vm10, %v1555_v63 }
 0x1eb   : > { %1748 = vst.msk [vmem:[#allocation4 + $0xc] sm:$0x40] %vm1559_vm6, %v1556_v61  ;;  %v1585_v13 = vadd.f32 %v1584_v9, %v1583_v10 }
 0x1ec   : > { %1743 = vst.msk [vmem:[#allocation4 + $0x2] sm:$0xff] %vm925_vm4, %v1555_v63  ;;  %1744 = vst.msk [vmem:[#allocation4 + $0xa] sm:$0xff] %vm925_vm4, %v1556_v61 }
 0x1ed   : > { %v1588_v14 = vadd.f32 %v1587_v11, %v1585_v13 }
 0x1ef   : > { %v1591_v15 = vadd.f32 %v1590_v12, %v1588_v14 }
 0x1f1   : > { %v1592_v17 = vmul.f32 0.2, %v1591_v15 }
 0x1f3   : > { %v1752_v18 = vld [vmem:[#allocation4] ss:$2 sm:$0xff]  ;;  %v1754_v19 = vld [vmem:[#allocation4 + $0x1] ss:$2 sm:$0xff]  ;;  %2165 = vmatmul.mubr.msk.f32.vlgmr.msra.gmra.mxu0 %vm925_vm4, %v1592_v17 }
 0x1f4   : > { %v1755_v20 = vadd.f32 %v1754_v19, %v1752_v18  ;;  %v1756_v22 = vld [vmem:[#allocation4 + $0x2] ss:$2 sm:$0xff]  ;;  %2177 = vmatpush3.msra.mxu0 %v1986_v16  ;;  %2182 = vmatprep.mubr.msk.f32.mxu0 %vm2204_vm5, %v2203_v3  ;;  %v1758_v25 = vld [vmem:[#allocation4 + $0x3] ss:$2 sm:$0xff] }
 0x1f5   : > { %2178 = vmatprep.subr.mxu0 %v2203_v3  ;;  %v1760_v27 = vld [vmem:[#allocation4 + $0x4] ss:$2 sm:$0xff]  ;;  %v1763_v29 = vld [vmem:[#allocation4 + $0x5] ss:$2 sm:$0xff] }
 0x1f6   : > { %v1757_v23 = vadd.f32 %v1756_v22, %v1755_v20  ;;  %2179 = vmatpush3.msra.mxu0 %v1985_v21  ;;  %v1766_v31 = vld [vmem:[#allocation4 + $0x6] ss:$2 sm:$0xff] }
 0x1f7   : > { %2180 = vmatprep.subr.mxu0 %v2203_v3  ;;  %v1988_v3 = vld [vmem:[%s2469_s6] ss:$0 sm:$0xff] }
 0x1f8   : > { %v1759_v26 = vadd.f32 %v1758_v25, %v1757_v23  ;;  %2181 = vmatpush3.msra.mxu0 %v1984_v24 }
 0x1fa   : > { %v1761_v28 = vadd.f32 %v1760_v27, %v1759_v26 }
 0x1fc   : > { %v1764_v30 = vadd.f32 %v1763_v29, %v1761_v28 }
 0x1fe   : > { %v1767_v32 = vadd.f32 %v1766_v31, %v1764_v30 }
 0x200   : > { %v1768_v33 = vmul.f32 0.14285715, %v1767_v32 }
 0x202   : > { %2183 = vmatmul.mubr.msk.f32.vlgmr.msra.gmra.mxu0 %vm925_vm4, %v1768_v33 }
 0x2a6   : > { %v1739_v34 = vpop.f32.mrf.mxu1 }
 0x2a8   : > { %v2175_v35 = vpop.f32.mrf.mxu1 }
 0x2b3   : > { %v1666_v36 = vpop.f32.mrf.mxu0 }
 0x2b4   : > { %v1740_v38 = vadd.f32 %v1739_v34, %v1666_v36 }
 0x2b5   : > { %v2166_v37 = vpop.f32.mrf.mxu0 }
 0x2c2   : > { %v1842_v39 = vpop.f32.mrf.mxu0 }
 0x2c3   : > { %v1846_v40 = vadd.f32 %v1842_v39, %v1740_v38 }
 0x2c4   : > { %v2184_v41 = vpop.f32.mrf.mxu0 }
 0x2c5   : > { %v1854_v42 = vadd.f32 %v1988_v3, %v1846_v40 }
 0x2c7   : > { %1856 = vst.msk [vmem:[%s276_s29] sm:$0xff] %vm1855_vm11, %v1854_v42 }
 0x2c8 PF: > { %s17_s24 = sadd.s32 1, %s2201_s24  }
 0x2c9   : > { %p14_p4 = scmp.ge.s32.totalorder %s17_s24, 4  }
 0x2cb   :  { %16 = sbr.rel (!%p14_p4) target bundleno = 1 (0x1), region = 98 }

</bundles_post_ra>
